<compile_context>
chip_gen: v5e
topology: v5e:2x2
jax: 0.10.0
libtpu: 0.0.40
codegen_flags: <defaults>
</compile_context>

<pallas_src>
import functools

import jax
import jax.numpy as jnp
from jax.experimental import pallas as pl
from jax.experimental.pallas import tpu as pltpu


def _focal_loss_kernel(logits_ref, target_ref, wrow_ref, out_ref, acc_ref, *,
                       gamma: float, size_average: bool, n_rows: int,
                       tile_rows: int, tiles_per_split: int, needs_mask: bool):
    c = pl.program_id(0)          # split (megacore) axis
    j = pl.program_id(1)          # tile axis within split (reduction axis)

    @pl.when(j == 0)
    def _():
        acc_ref[...] = jnp.zeros_like(acc_ref)

    # f32 math in-kernel regardless of the HBM dtype of the logits.
    x = logits_ref[...].astype(jnp.float32)          # (tn, C)
    t = target_ref[...]                              # (tn, 1) int32
    w_sel = wrow_ref[...]                            # (tn, 1) f32 == weights[target]

    # Numerically stable softmax statistics along the class axis (dim=1).
    m = jnp.max(x, axis=1, keepdims=True)            # XLU
    z = x - m                                        # VALU
    ez = jnp.exp(z)                                  # EUP
    # Denominator via MXU (ones-vector matmul) -> frees an XLU reduction.
    ones_c = jnp.ones((x.shape[1], 1), jnp.float32)
    s = jnp.dot(ez, ones_c, preferred_element_type=jnp.float32)      # (tn, 1)

    # Gather the target's shifted logit directly (no log_softmax tensor).
    col = jax.lax.broadcasted_iota(jnp.int32, x.shape, 1)            # (tn, C)
    zt = jnp.sum(jnp.where(col == t, z, 0.0), axis=1, keepdims=True)  # (tn, 1)

    logpt = zt - jnp.log(s)                          # (tn, 1)
    pt = jnp.exp(logpt)                              # softmax[target]

    # Focal term, specialized for common small-integer gammas.
    g = float(gamma)
    if g == 0.0:
        focal = jnp.ones_like(pt)
    elif g == 1.0:
        focal = 1.0 - pt
    elif g == 2.0:
        one_minus = 1.0 - pt
        focal = one_minus * one_minus
    else:
        focal = (1.0 - pt) ** g

    loss = -1.0 * w_sel * focal * logpt              # (tn, 1)

    if not needs_mask:
        # Every tile is full and unique: no masking code traced at all.
        acc_ref[...] += jnp.sum(loss, keepdims=True)
    else:
        b = c * tiles_per_split + j                  # unclamped global tile idx
        is_partial = (b + 1) * tile_rows > n_rows

        @pl.when(jnp.logical_not(is_partial))
        def _():
            acc_ref[...] += jnp.sum(loss, keepdims=True)

        @pl.when(is_partial)
        def _():
            row = b * tile_rows + jax.lax.broadcasted_iota(
                jnp.int32, loss.shape, 0)
            # NOTE: must stay a select (not multiply-by-mask): padded/duplicate
            # rows may hold NaN/Inf from garbage VMEM run through exp/log.
            acc_ref[...] += jnp.sum(
                jnp.where(row < n_rows, loss, 0.0), keepdims=True)

    @pl.when(j == pl.num_programs(1) - 1)
    def _():
        total = acc_ref[...]                         # (1, 1)
        if size_average:
            total = total * jnp.float32(1.0 / n_rows)
        out_ref[...] = jnp.broadcast_to(total, out_ref.shape).astype(out_ref.dtype)


def focal_loss(logits, target, weights, *, gamma=0.0, size_average=True,
               num_splits=2, tile_rows=None,
               vmem_budget_bytes=12 * 1024 * 1024, vmem_limit_bytes=None):
    """Pallas TPU implementation of FocalLoss.forward.

    logits:  (N, C) float (any float dtype; streamed as-is, f32 math in-kernel)
    target:  (N,)   int class indices
    weights: (C,)   per-class weights
    returns: scalar float32

    num_splits: leading "parallel" grid axis (megacore). Use 2 on v7x; it is
      harmless (near-zero overhead) on single-core v5e/v6e.
    tile_rows: optional override; by default derived from vmem_budget_bytes
      (double-buffered input + ~4 f32 (tn,C) temps).
    """
    n, c = logits.shape
    in_itemsize = jnp.dtype(logits.dtype).itemsize

    target_i = target.astype(jnp.int32).reshape(n, 1)
    # Per-row class weight gathered in the wrapper (cheap XLA gather): the
    # kernel never sees the (1,C) weights broadcast.
    w_row = weights.astype(jnp.float32)[target.astype(jnp.int32)].reshape(n, 1)

    # Budget-driven tile size.
    if tile_rows is None:
        bytes_per_row = c * (2 * in_itemsize + 4 * 4) + 32
        tile_rows = max(8, vmem_budget_bytes // bytes_per_row)
    tile_rows = int(tile_rows)
    if n <= tile_rows:
        tn = n                                    # full array: any row count ok
    else:
        tn = max(8, (tile_rows // 8) * 8)         # multiple of 8 sublanes

    num_tiles = pl.cdiv(n, tn)
    num_splits = max(1, min(int(num_splits), int(num_tiles)))
    tiles_per_split = pl.cdiv(num_tiles, num_splits)
    needs_mask = (n % tn != 0) or (num_splits * tiles_per_split != num_tiles)

    def row_block(split, step):
        # Clamp so the DMA never indexes past the last valid block; duplicated
        # tiles in the last split are fully masked out inside the kernel.
        return jnp.minimum(split * tiles_per_split + step, num_tiles - 1)

    kernel = functools.partial(
        _focal_loss_kernel,
        gamma=float(gamma),
        size_average=bool(size_average),
        n_rows=int(n),
        tile_rows=int(tn),
        tiles_per_split=int(tiles_per_split),
        needs_mask=bool(needs_mask),
    )

    out = pl.pallas_call(
        kernel,
        out_shape=jax.ShapeDtypeStruct((num_splits * 8, 128), jnp.float32),
        grid_spec=pltpu.PrefetchScalarGridSpec(
            num_scalar_prefetch=0,
            grid=(num_splits, int(tiles_per_split)),
            in_specs=[
                pl.BlockSpec((tn, c), lambda s, j: (row_block(s, j), 0)),  # logits
                pl.BlockSpec((tn, 1), lambda s, j: (row_block(s, j), 0)),  # target
                pl.BlockSpec((tn, 1), lambda s, j: (row_block(s, j), 0)),  # weights[target]
            ],
            out_specs=pl.BlockSpec((8, 128), lambda s, j: (s, 0)),
            scratch_shapes=[pltpu.VMEM((1, 1), jnp.float32)],  # scalar accumulator
        ),
        compiler_params=pltpu.CompilerParams(
            dimension_semantics=("parallel", "arbitrary"),
            vmem_limit_bytes=vmem_limit_bytes,
        ),
    )(logits, target_i, w_row)

    partials = out.reshape(num_splits, 8, 128)[:, 0, 0]
    return jnp.sum(partials)


def _reference(logits_f32, target, weights, gamma, size_average):
    sm = jax.nn.softmax(logits_f32, axis=1)
    lsm = jax.nn.log_softmax(logits_f32, axis=1)
    pt = jnp.take_along_axis(sm, target[:, None], axis=1)[:, 0]
    logpt = jnp.take_along_axis(lsm, target[:, None], axis=1)[:, 0]
    loss = -weights[target] * (1.0 - pt) ** gamma * logpt
    return jnp.mean(loss) if size_average else jnp.sum(loss)


if __name__ == "__main__":
    # Small deterministic example. N deliberately not a multiple of the tile
    # so the masked tail, the megacore split, and the clamped duplicate-tile
    # paths are all exercised (grid = (2 splits, 2 tiles)).
    N, C = 40, 16
    gamma = 2.0
    key = jax.random.PRNGKey(0)
    k_logits, k_target = jax.random.split(key)

    logits = jax.random.normal(k_logits, (N, C), dtype=jnp.float32)
    target = jax.random.randint(k_target, (N,), 0, C, dtype=jnp.int32)
    weights = jnp.linspace(0.5, 1.5, C, dtype=jnp.float32)

    # f32, mean reduction, forced small tiles + 2-way split.
    loss = focal_loss(logits, target, weights, gamma=gamma,
                      size_average=True, tile_rows=16, num_splits=2)
    loss = jax.block_until_ready(loss)
    ref = _reference(logits, target, weights, gamma, True)
    assert jnp.allclose(loss, ref, rtol=1e-5, atol=1e-6), (loss, ref)

    # sum reduction, single split.
    loss_sum = focal_loss(logits, target, weights, gamma=gamma,
                          size_average=False, tile_rows=16, num_splits=1)
    loss_sum = jax.block_until_ready(loss_sum)
    ref_sum = _reference(logits, target, weights, gamma, False)
    assert jnp.allclose(loss_sum, ref_sum, rtol=1e-5, atol=1e-5), (loss_sum, ref_sum)

    # Default budget-driven tiling (single full tile at this size), gamma=0.
    loss_def = focal_loss(logits, target, weights, gamma=0.0, size_average=True)
    loss_def = jax.block_until_ready(loss_def)
    ref_def = _reference(logits, target, weights, 0.0, True)
    assert jnp.allclose(loss_def, ref_def, rtol=1e-5, atol=1e-6), (loss_def, ref_def)

    # bf16-in-HBM path (no wrapper upcast; f32 math inside the kernel).
    logits_bf16 = logits.astype(jnp.bfloat16)
    loss_bf16 = focal_loss(logits_bf16, target, weights, gamma=gamma,
                           size_average=True, tile_rows=16, num_splits=2)
    loss_bf16 = jax.block_until_ready(loss_bf16)
    ref_bf16 = _reference(logits_bf16.astype(jnp.float32), target, weights, gamma, True)
    assert jnp.allclose(loss_bf16, ref_bf16, rtol=1e-4, atol=1e-5), (loss_bf16, ref_bf16)

    print("KERNEL_OK")
</pallas_src>

<mosaic_0001>
module attributes {stable_mosaic.version = 11 : i64} {
  func.func @_focal_loss_kernel(%arg0: i32, %arg1: i32, %arg2: memref<16x16xf32, #tpu.memory_space<vmem>>, %arg3: memref<16x1xi32, #tpu.memory_space<vmem>>, %arg4: memref<16x1xf32, #tpu.memory_space<vmem>>, %arg5: memref<8x128xf32, #tpu.memory_space<vmem>>, %arg6: memref<1x1xf32, #tpu.memory_space<vmem>>) attributes {dimension_semantics = [#tpu.dimension_semantics<parallel>, #tpu.dimension_semantics<arbitrary>], iteration_bounds = array<i64: 2, 2>, scalar_prefetch = 0 : i64, scratch_operands = 1 : i64, tpu.core_type = #tpu.core_type<tc>, window_params = [{transform_indices = @transform_0, window_bounds = array<i64: 16, 16>}, {transform_indices = @transform_1, window_bounds = array<i64: 16, 1>}, {transform_indices = @transform_2, window_bounds = array<i64: 16, 1>}, {transform_indices = @transform_3, window_bounds = array<i64: 8, 128>}]} {
    %c0_i32 = arith.constant 0 : i32
    %0 = arith.cmpi eq, %arg1, %c0_i32 : i32
    %1 = arith.extui %0 : i1 to i32
    %c0_i32_0 = arith.constant 0 : i32
    %2 = arith.cmpi ne, %1, %c0_i32_0 : i32
    scf.if %2 {
      %cst_16 = arith.constant 0.000000e+00 : f32
      %43 = vector.broadcast %cst_16 : f32 to vector<1x1xf32>
      %c0_17 = arith.constant 0 : index
      %c0_18 = arith.constant 0 : index
      %44 = vector.load %arg6[%c0_17, %c0_18] : memref<1x1xf32, #tpu.memory_space<vmem>>, vector<1x1xf32>
      tpu.vector_store %arg6[%c0_17, %c0_18], %43 {strides = array<i32>} : memref<1x1xf32, #tpu.memory_space<vmem>>, vector<1x1xf32>,
    } else {
    }
    %c0 = arith.constant 0 : index
    %c0_1 = arith.constant 0 : index
    %3 = vector.load %arg2[%c0, %c0_1] : memref<16x16xf32, #tpu.memory_space<vmem>>, vector<16x16xf32>
    %c0_2 = arith.constant 0 : index
    %c0_3 = arith.constant 0 : index
    %4 = vector.load %arg3[%c0_2, %c0_3] : memref<16x1xi32, #tpu.memory_space<vmem>>, vector<16x1xi32>
    %c0_4 = arith.constant 0 : index
    %c0_5 = arith.constant 0 : index
    %5 = vector.load %arg4[%c0_4, %c0_5] : memref<16x1xf32, #tpu.memory_space<vmem>>, vector<16x1xf32>
    %cst = arith.constant dense<0xFF800000> : vector<16xf32>
    %6 = vector.multi_reduction <maximumf>, %3, %cst [1] : vector<16x16xf32> to vector<16xf32>
    %7 = vector.shape_cast %6 : vector<16xf32> to vector<16x1xf32>
    %8 = vector.broadcast %7 : vector<16x1xf32> to vector<16x16xf32>
    %9 = arith.subf %3, %8 : vector<16x16xf32>
    %10 = math.exp %9 : vector<16x16xf32>
    %cst_6 = arith.constant 1.000000e+00 : f32
    %11 = vector.broadcast %cst_6 : f32 to vector<16x1xf32>
    %cst_7 = arith.constant dense<0.000000e+00> : vector<16x1xf32>
    %12 = tpu.matmul %10, %11, %cst_7 {dimension_numbers = #tpu.dot_dimension_numbers<[1], [0], [0], [1], [0, 0, 1, 1], [], []>} : vector<16x16xf32>, vector<16x1xf32>, vector<16x1xf32> -> vector<16x1xf32>
    %13 = tpu.iota {dimensions = array<i32: 1>} : vector<16x16xi32>
    %14 = vector.broadcast %4 : vector<16x1xi32> to vector<16x16xi32>
    %15 = arith.cmpi eq, %13, %14 : vector<16x16xi32>
    %cst_8 = arith.constant 0.000000e+00 : f32
    %16 = vector.broadcast %cst_8 : f32 to vector<16x16xf32>
    %17 = arith.select %15, %9, %16 : vector<16x16xi1>, vector<16x16xf32>
    %cst_9 = arith.constant dense<0.000000e+00> : vector<16xf32>
    %18 = vector.multi_reduction <add>, %17, %cst_9 [1] : vector<16x16xf32> to vector<16xf32>
    %19 = vector.shape_cast %18 : vector<16xf32> to vector<16x1xf32>
    %20 = math.log %12 : vector<16x1xf32>
    %21 = arith.subf %19, %20 : vector<16x1xf32>
    %22 = math.exp %21 : vector<16x1xf32>
    %cst_10 = arith.constant 1.000000e+00 : f32
    %23 = vector.broadcast %cst_10 : f32 to vector<16x1xf32>
    %24 = arith.subf %23, %22 : vector<16x1xf32>
    %25 = arith.mulf %24, %24 : vector<16x1xf32>
    %cst_11 = arith.constant -1.000000e+00 : f32
    %26 = vector.broadcast %cst_11 : f32 to vector<16x1xf32>
    %27 = arith.mulf %26, %5 : vector<16x1xf32>
    %28 = arith.mulf %27, %25 : vector<16x1xf32>
    %29 = arith.mulf %28, %21 : vector<16x1xf32>
    %c2_i32 = arith.constant 2 : i32
    %30 = arith.muli %arg0, %c2_i32 : i32
    %31 = arith.addi %30, %arg1 : i32
    %c1_i32 = arith.constant 1 : i32
    %32 = arith.addi %31, %c1_i32 : i32
    %c16_i32 = arith.constant 16 : i32
    %33 = arith.muli %32, %c16_i32 : i32
    %c40_i32 = arith.constant 40 : i32
    %34 = arith.cmpi sgt, %33, %c40_i32 : i32
    %true = arith.constant true
    %35 = arith.xori %34, %true : i1
    %36 = arith.extui %35 : i1 to i32
    %c0_i32_12 = arith.constant 0 : i32
    %37 = arith.cmpi ne, %36, %c0_i32_12 : i32
    scf.if %37 {
      %c0_16 = arith.constant 0 : index
      %c0_17 = arith.constant 0 : index
      %43 = vector.load %arg6[%c0_16, %c0_17] : memref<1x1xf32, #tpu.memory_space<vmem>>, vector<1x1xf32>
      %44 = vector.shape_cast %29 : vector<16x1xf32> to vector<1x16x1xf32>
      %cst_18 = arith.constant dense<0.000000e+00> : vector<1xf32>
      %45 = vector.multi_reduction <add>, %44, %cst_18 [1, 2] : vector<1x16x1xf32> to vector<1xf32>
      %46 = vector.shape_cast %45 : vector<1xf32> to vector<1x1x1xf32>
      %47 = vector.extract %46[0, 0, 0] : f32 from vector<1x1x1xf32>
      %48 = vector.broadcast %47 : f32 to vector<1x1xf32>
      %49 = arith.addf %43, %48 : vector<1x1xf32>
      %c0_19 = arith.constant 0 : index
      %c0_20 = arith.constant 0 : index
      %50 = vector.load %arg6[%c0_19, %c0_20] : memref<1x1xf32, #tpu.memory_space<vmem>>, vector<1x1xf32>
      tpu.vector_store %arg6[%c0_19, %c0_20], %49 {strides = array<i32>} : memref<1x1xf32, #tpu.memory_space<vmem>>, vector<1x1xf32>,
    } else {
    }
    %38 = arith.extui %34 : i1 to i32
    %c0_i32_13 = arith.constant 0 : i32
    %39 = arith.cmpi ne, %38, %c0_i32_13 : i32
    scf.if %39 {
      %c16_i32_16 = arith.constant 16 : i32
      %43 = arith.muli %31, %c16_i32_16 : i32
      %44 = tpu.iota {dimensions = array<i32: 0>} : vector<16x1xi32>
      %45 = vector.broadcast %43 : i32 to vector<16x1xi32>
      %46 = arith.addi %45, %44 : vector<16x1xi32>
      %c0_17 = arith.constant 0 : index
      %c0_18 = arith.constant 0 : index
      %47 = vector.load %arg6[%c0_17, %c0_18] : memref<1x1xf32, #tpu.memory_space<vmem>>, vector<1x1xf32>
      %c40_i32_19 = arith.constant 40 : i32
      %48 = vector.broadcast %c40_i32_19 : i32 to vector<16x1xi32>
      %49 = arith.cmpi slt, %46, %48 : vector<16x1xi32>
      %cst_20 = arith.constant 0.000000e+00 : f32
      %50 = vector.broadcast %cst_20 : f32 to vector<16x1xf32>
      %51 = arith.select %49, %29, %50 : vector<16x1xi1>, vector<16x1xf32>
      %52 = vector.shape_cast %51 : vector<16x1xf32> to vector<1x16x1xf32>
      %cst_21 = arith.constant dense<0.000000e+00> : vector<1xf32>
      %53 = vector.multi_reduction <add>, %52, %cst_21 [1, 2] : vector<1x16x1xf32> to vector<1xf32>
      %54 = vector.shape_cast %53 : vector<1xf32> to vector<1x1x1xf32>
      %55 = vector.extract %54[0, 0, 0] : f32 from vector<1x1x1xf32>
      %56 = vector.broadcast %55 : f32 to vector<1x1xf32>
      %57 = arith.addf %47, %56 : vector<1x1xf32>
      %c0_22 = arith.constant 0 : index
      %c0_23 = arith.constant 0 : index
      %58 = vector.load %arg6[%c0_22, %c0_23] : memref<1x1xf32, #tpu.memory_space<vmem>>, vector<1x1xf32>
      tpu.vector_store %arg6[%c0_22, %c0_23], %57 {strides = array<i32>} : memref<1x1xf32, #tpu.memory_space<vmem>>, vector<1x1xf32>,
    } else {
    }
    %c1_i32_14 = arith.constant 1 : i32
    %40 = arith.cmpi eq, %arg1, %c1_i32_14 : i32
    %41 = arith.extui %40 : i1 to i32
    %c0_i32_15 = arith.constant 0 : i32
    %42 = arith.cmpi ne, %41, %c0_i32_15 : i32
    scf.if %42 {
      %c0_16 = arith.constant 0 : index
      %c0_17 = arith.constant 0 : index
      %43 = vector.load %arg6[%c0_16, %c0_17] : memref<1x1xf32, #tpu.memory_space<vmem>>, vector<1x1xf32>
      %cst_18 = arith.constant 2.500000e-02 : f32
      %44 = vector.broadcast %cst_18 : f32 to vector<1x1xf32>
      %45 = arith.mulf %43, %44 : vector<1x1xf32>
      %46 = vector.shape_cast %45 : vector<1x1xf32> to vector<1x1xf32>
      %47 = vector.broadcast %46 : vector<1x1xf32> to vector<8x128xf32>
      %c0_19 = arith.constant 0 : index
      %c0_20 = arith.constant 0 : index
      %48 = vector.load %arg5[%c0_19, %c0_20] : memref<8x128xf32, #tpu.memory_space<vmem>>, vector<8x128xf32>
      tpu.vector_store %arg5[%c0_19, %c0_20], %47 {strides = array<i32>} : memref<8x128xf32, #tpu.memory_space<vmem>>, vector<8x128xf32>,
    } else {
    }
    return
  }
  func.func @transform_0(%arg0: i32, %arg1: i32) -> (i32, i32) {
    %c2_i32 = arith.constant 2 : i32
    %0 = arith.muli %arg0, %c2_i32 : i32
    %1 = arith.addi %0, %arg1 : i32
    %c2_i32_0 = arith.constant 2 : i32
    %2 = arith.minsi %1, %c2_i32_0 : i32
    %c0_i32 = arith.constant 0 : i32
    %c0_i32_1 = arith.constant 0 : i32
    return %2, %c0_i32 : i32, i32
  }
  func.func @transform_1(%arg0: i32, %arg1: i32) -> (i32, i32) {
    %c2_i32 = arith.constant 2 : i32
    %0 = arith.muli %arg0, %c2_i32 : i32
    %1 = arith.addi %0, %arg1 : i32
    %c2_i32_0 = arith.constant 2 : i32
    %2 = arith.minsi %1, %c2_i32_0 : i32
    %c0_i32 = arith.constant 0 : i32
    %c0_i32_1 = arith.constant 0 : i32
    return %2, %c0_i32 : i32, i32
  }
  func.func @transform_2(%arg0: i32, %arg1: i32) -> (i32, i32) {
    %c2_i32 = arith.constant 2 : i32
    %0 = arith.muli %arg0, %c2_i32 : i32
    %1 = arith.addi %0, %arg1 : i32
    %c2_i32_0 = arith.constant 2 : i32
    %2 = arith.minsi %1, %c2_i32_0 : i32
    %c0_i32 = arith.constant 0 : i32
    %c0_i32_1 = arith.constant 0 : i32
    return %2, %c0_i32 : i32, i32
  }
  func.func @transform_3(%arg0: i32, %arg1: i32) -> (i32, i32) {
    %c0_i32 = arith.constant 0 : i32
    %c0_i32_0 = arith.constant 0 : i32
    return %arg0, %c0_i32 : i32, i32
  }
}

</mosaic_0001>

<bundles_post_ra>
// kernel: tpu_custom_call.1
= control target key start
LH: loop header
LB: loop body
LE: loop exit
PB: predicated region body
PF: predicated region fallthrough
CT: control target
= control target key end

     0   :  { %8 = vsyncpa [#allocation4], 0  ;;  %s1058_s0 = inlined_call_operand.vmem [shape: f32[40,16], index: 0, kind: input, shape index: {}]   ;;  %s1059_s1 = inlined_call_operand.vmem [shape: s32[40,1], index: 1, kind: input, shape index: {}]   ;;  %s1060_s2 = inlined_call_operand.vmem [shape: f32[40,1], index: 2, kind: input, shape index: {}]   ;;  %s1061_s3 = inlined_call_operand.hbm [shape: f32[16,128], index: 3, kind: output, shape index: {}]  }
   0x1   :  { %10 = vsyncpa [#allocation4 + $0x1], 0  ;;  %s897_s12 = smov 0   ;;  %s899_s13 = smov 0  }
   0x2   :  { %s901_s14 = smov 0   ;;  %s903_s15 = smov 0  }
   0x3   :  { %s905_s16 = smov 0   ;;  %s907_s17 = smov 0  }
   0x4   :  { %s909_s18 = smov 0   ;;  %s911_s19 = smov 0  }
   0x5 LB: > { %s645_s20 = sadd.s32 4294967295, %s871_s19   ;;  %s646_s21 = sadd.s32 4294967294, %s871_s19   ;;  %s871_s19 = sphi %s911_s19, %s16_s19   ;;  %s867_s18 = sphi %s909_s18, %s1075_s18   ;;  %s863_s17 = sphi %s907_s17, %s1074_s17   ;;  %s859_s16 = sphi %s905_s16, %s1073_s16   ;;  %s855_s15 = sphi %s903_s15, %s1072_s15   ;;  %s851_s14 = sphi %s901_s14, %s1071_s14   ;;  %s847_s13 = sphi %s899_s13, %s1070_s13   ;;  %s843_s12 = sphi %s897_s12, %s1069_s12  }
   0x6   : > { %s25_s22 = sadd.s32 1, %s863_s17  ;;  %s28_s23 = sadd.s32 1, %s867_s18 }
   0x7   : > { %p26_p0 = scmp.ge.s32.totalorder %s25_s22, 2  ;;  %p147_p1 = scmp.ne.s32.totalorder %s851_s14, %s847_s13 }
   0x8   : > { %p148_p2 = scmp.eq.s32.totalorder %s645_s20, 3  ;;  %p153_p4 = scmp.ne.s32.totalorder %s847_s13, %s843_s12 }
   0x9   : > { %s1077_s22 = smov (%p26_p0, %s25_s22), 0  ;;  %s1079_s23 = smov (!%p26_p0, %s28_s23), %s867_s18 }
   0xa   : > { %p946_p3 = por %p148_p2, %p147_p1  ;;  %p30_p5 = scmp.ge.s32.totalorder %s1079_s23, 2 }
   0xb   : > { %p154_p6 = scmp.eq.s32.totalorder %s646_s21, 3  ;;  %p655_p7 = scmp.ge.s32.totalorder %s871_s19, 1 }
   0xc   : > { %p247_p8 = scmp.lt.s32.totalorder %s871_s19, 5  ;;  %s1081_s23 = smov (%p30_p5, %s1079_s23), 0 }
   0xd   : > { %1065 = sst [smem:[#allocation6_spill]] %s1081_s23  ;;  %p956_p9 = por %p154_p6, %p153_p4 }
   0xe   : > { %p248_p10 = pnand %p655_p7, %p247_p8  ;;  %s134_s26 = ssub.s32 %s867_s18, %s1081_s23 }
   0xf   : > { %s137_s27 = sadd.s32 1, %s851_s14  ;;  %p135_p11 = scmp.eq.s32.totalorder %s134_s26, 0 }
  0x10   : > { %251 = sbr.rel (%p248_p10) target bundleno = 852 (0x354), region = 32  ;;  %s1062_s29 = sand.u32 (!%p248_p10), 1, %s847_s13  }
  0x11   : > { %s964_s28 = scalar_select %p135_p11, %s851_s14, %s137_s27  }
  0x12   : > { %s657_s30 = sshll.u32 (!%p248_p10), %s859_s16, 1  ;;  %s970_s4 = sshll.u32 (!%p248_p10), %s1062_s29, 3 }
  0x13   : > { %s973_s5 = sadd.s32 (!%p248_p10), %s855_s15, %s657_s30  ;;  %s304_s23 = scalar_lea.vmem (!%p248_p10), [#allocation3], %s970_s4 }
  0x14   : > { %p307_p12 = scmp.lt.s32.totalorder (!%p248_p10), %s973_s5, 2  ;;  %p666_p0 = scmp.ne.s32.totalorder (!%p248_p10), %s855_s15, 0 }
  0x16   : > { %s308_s6 = scalar_select %p307_p12, %s973_s5, 2 }
  0x18   : > { %s658_s7 = sshll.u32 %s308_s6, 1 }
  0x19   : > { %p314_p13 = scmp.lt.s32.totalorder %s658_s7, 4 }
  0x1a   : > { %374 = sbr.rel (%p666_p0) target bundleno = 33 (0x21), region = 36 }
  0x1b   : > { %s1083_s7 = smov (!%p314_p13, %s658_s7), 4 }
  0x1c   : > { %s659_s8 = sshll.u32 %s1083_s7, 3 }
  0x1d   : > { %s317_s11 = scalar_lea.vmem %s1058_s0, %s659_s8  ;;  %s339_s26 = scalar_lea.vmem %s1059_s1, %s659_s8 }
  0x1e   : > { %s986_s30 = scalar_lea.vmem %s1060_s2, %s659_s8 }
  0x1f   : > { %vm375_vm0 = vcmask 0   ;;  %v873_v0 = vmov 0.0  }
  0x20   : > { %376 = vst.msk [vmem:[#allocation2] sm:$0x1] %vm375_vm0, %v873_v0 }
  0x21 PF: > { %v377_v1 = vld [vmem:[%s317_s11] sm:$0xff]  ;;  %vm383_vm1 = vcmask 130048   ;;  %v874_v4 = vmov 0   ;;  %v378_v5 = vld [vmem:[%s317_s11 + $0x8] sm:$0xff]  ;;  %v875_v8 = vmov 1.0   ;;  %v425_v9 = vlaneseq  ;;  %s679_s29 = sshll.u32 %s973_s5, 4 }
  0x22   : > { %v379_v2 = vld [vmem:[%s339_s26] sm:$0xff]  ;;  %v384_v3 = vsel %vm383_vm1, %v377_v1, -inf  ;;  %762 = vset.pattern.permute.xlu1 %v874_v4  ;;  %763 = vset.pattern.permute.xlu0 %v874_v4  ;;  %v387_v6 = vsel %vm383_vm1, %v378_v5, -inf  ;;  %v380_v7 = vld [vmem:[%s339_s26 + $0x8] sm:$0xff]  ;;  %s1000_s6 = sadd.s32 16, %s679_s29 }
  0x23   : > { %385 = vmax.xlane.f32.xlu0 %v384_v3  ;;  %428 = vperm.xlu1 %762, %v379_v2   ;;  %v426_v10 = vand.u32 127, %v425_v9  ;;  %v381_v35 = vld [vmem:[%s986_s30] sm:$0xff]  ;;  %v382_v43 = vld [vmem:[%s986_s30 + $0x8] sm:$0xff]  ;;  %p671_p1 = scmp.gt.s32.totalorder %s1000_s6, 40 }
  0x24   : > { %416 = vmatpush.msra.mxu0 %v875_v8  ;;  %681 = vmatpush.msra.mxu1 %v875_v8  ;;  %v457_v40 = vmul.f32 -1.0, %v381_v35  ;;  %v458_v47 = vmul.f32 -1.0, %v382_v43 }
  0x26   : > { %417 = vmatpush.msra.mxu0 %v875_v8  ;;  %682 = vmatpush.msra.mxu1 %v875_v8 }
  0x2b   : > { %388 = vmax.xlane.f32.xlu0 %v387_v6  ;;  %431 = vperm.xlu1 %762, %v380_v7  }
  0x95   : > { %v429_v11 = vpop.permute.xlu1 %428 }
  0x96   : > { %v386_v12 = vpop.xlane.xlu0 %385  ;;  %vm433_vm2 = vcmp.eq.s32.totalorder %v426_v10, %v429_v11 }
  0x97   : > { %v390_v13 = vsub.f32 %v377_v1, %v386_v12 }
  0x99   : > { %v392_v14 = vmul.f32 1.442695, %v390_v13  ;;  %v435_v15 = vsel %vm433_vm2, %v390_v13, 0.0 }
  0x9a   : > { %v437_v16 = vsel %vm383_vm1, %v435_v15, 0.0 }
  0x9b   : > { %764 = vpow2.f32 %v392_v14  ;;  %438 = vadd.xlane.f32.xlu2 %v437_v16 }
  0x9d   : > { %v432_v17 = vpop.permute.xlu1 %431 }
  0x9e   : > { %v389_v18 = vpop.xlane.xlu0 %388  ;;  %vm434_vm3 = vcmp.eq.s32.totalorder %v426_v10, %v432_v17 }
  0x9f   : > { %v391_v19 = vsub.f32 %v378_v5, %v389_v18 }
  0xa1   : > { %v765_v20 = vpop.eup %764  ;;  %v394_v21 = vmul.f32 1.442695, %v391_v19  ;;  %v436_v22 = vsel %vm434_vm3, %v391_v19, 0.0 }
  0xa2   : > { %667 = vmatmul.msk.f32.vlgmr.msra.gmra.mxu0 %vm383_vm1, %v765_v20  ;;  %v440_v23 = vsel %vm383_vm1, %v436_v22, 0.0 }
  0xa3   : > { %766 = vpow2.f32 %v394_v21  ;;  %441 = vadd.xlane.f32.xlu2 %v440_v23 }
  0xa9   : > { %v767_v24 = vpop.eup %766 }
  0xaa   : > { %668 = vmatmul.msk.f32.vlgmr.msra.gmra.mxu1 %vm383_vm1, %v767_v24 }
 0x10e   : > { %v439_v27 = vpop.xlane.xlu2 %438 }
 0x116   : > { %v442_v34 = vpop.xlane.xlu2 %441 }
 0x11f   : > { %v419_v25 = vpop.f32.mrf.mxu0 }
 0x120   : > { %768 = vlog2.f32 %v419_v25 }
 0x126   : > { %v769_v26 = vpop.eup %768 }
 0x127   : > { %v444_v28 = vmul.f32 0.6931472, %v769_v26  ;;  %v422_v29 = vpop.f32.mrf.mxu1 }
 0x128   : > { %770 = vlog2.f32 %v422_v29 }
 0x129   : > { %v447_v30 = vsub.f32 %v439_v27, %v444_v28 }
 0x12b   : > { %v449_v31 = vmul.f32 1.442695, %v447_v30 }
 0x12d   : > { %772 = vpow2.f32 %v449_v31 }
 0x12e   : > { %v771_v32 = vpop.eup %770 }
 0x12f   : > { %v446_v33 = vmul.f32 0.6931472, %v771_v32 }
 0x131   : > { %v448_v36 = vsub.f32 %v442_v34, %v446_v33 }
 0x133   : > { %v773_v37 = vpop.eup %772  ;;  %v451_v38 = vmul.f32 1.442695, %v448_v36 }
 0x134   : > { %v453_v39 = vsub.f32 1.0, %v773_v37 }
 0x135   : > { %774 = vpow2.f32 %v451_v38 }
 0x136   : > { %v455_v41 = vmul.f32 %v453_v39, %v453_v39 }
 0x138   : > { %v459_v42 = vmul.f32 %v457_v40, %v455_v41 }
 0x13a   : > { %v461_v44 = vmul.f32 %v459_v42, %v447_v30 }
 0x13b   : > { %v775_v45 = vpop.eup %774 }
 0x13c   : > { %v454_v46 = vsub.f32 1.0, %v775_v45 }
 0x13e   : > { %v456_v48 = vmul.f32 %v454_v46, %v454_v46  ;;  %471 = sbr.rel (%p671_p1) target bundleno = 509 (0x1fd), region = 40 }
 0x140   : > { %v460_v49 = vmul.f32 %v458_v47, %v456_v48 }
 0x142   : > { %v462_v50 = vmul.f32 %v460_v49, %v448_v36 }
 0x143   : > { %vm473_vm4 = vcmask 7168   ;;  %v472_v61 = vld [vmem:[#allocation2] sm:$0x1]  ;;  %vm488_vm5 = vcmask 0  }
 0x144   : > { %v474_v51 = vsel %vm473_vm4, %v461_v44, 0.0  ;;  %v475_v52 = vsel %vm473_vm4, %v462_v50, 0.0 }
 0x145   : > { %v476_v53 = vadd.f32 %v475_v52, %v474_v51 }
 0x147   : > { %477 = vadd.xlane.f32.xlu0 %v476_v53 }
 0x1ba   : > { %v478_v54 = vpop.xlane.xlu0 %477 }
 0x1bb   : > { %v479_v55 = vrot.slane %v478_v54, 4 }
 0x1bd   : > { %v480_v56 = vadd.f32 %v479_v55, %v478_v54 }
 0x1bf   : > { %v481_v57 = vrot.slane %v480_v56, 2 }
 0x1c1   : > { %v482_v58 = vadd.f32 %v481_v57, %v480_v56 }
 0x1c3   : > { %v483_v59 = vrot.slane %v482_v58, 1 }
 0x1c5   : > { %v484_v60 = vadd.f32 %v483_v59, %v482_v58 }
 0x1c7   : > { %683 = vpush %v484_v60 }
 0x1f8   : > { %s684_s7 = spop %683 }
 0x1f9   : > { %v486_v62 = vstv %s684_s7 }
 0x1fa   : > { %v487_v63 = vadd.f32 %v486_v62, %v472_v61 }
 0x1fc   : > { %489 = vst.msk [vmem:[#allocation2] sm:$0x1] %vm488_vm5, %v487_v63 }
 0x1fd PF: > { %p672_p2 = scmp.le.s32.totalorder %s1000_s6, 40 }
 0x1ff   : > { %492 = sbr.rel (%p672_p2) target bundleno = 709 (0x2c5), region = 44 }
 0x204   : > { %v495_v0 = vshrl.u32 %v425_v9, 7  ;;  %v497_v1 = vstv %s679_s29  ;;  %vm505_vm6 = vcmask 7168   ;;  %v500_v17 = vld [vmem:[#allocation2] sm:$0x1]  ;;  %vm520_vm9 = vcmask 0  }
 0x206   : > { %v496_v2 = vadd.s32 8, %v495_v0  ;;  %v498_v3 = vadd.s32 %v497_v1, %v495_v0 }
 0x208   : > { %v499_v4 = vadd.s32 %v497_v1, %v496_v2  ;;  %vm501_vm7 = vcmp.lt.s32.totalorder %v498_v3, 40 }
 0x209   : > { %v503_v5 = vsel %vm501_vm7, %v461_v44, 0.0 }
 0x20a   : > { %vm502_vm8 = vcmp.lt.s32.totalorder %v499_v4, 40  ;;  %v506_v6 = vsel %vm505_vm6, %v503_v5, 0.0 }
 0x20b   : > { %v504_v7 = vsel %vm502_vm8, %v462_v50, 0.0 }
 0x20c   : > { %v507_v8 = vsel %vm505_vm6, %v504_v7, 0.0 }
 0x20d   : > { %v508_v10 = vadd.f32 %v507_v8, %v506_v6 }
 0x20f   : > { %509 = vadd.xlane.f32.xlu0 %v508_v10 }
 0x282   : > { %v510_v11 = vpop.xlane.xlu0 %509 }
 0x283   : > { %v511_v12 = vrot.slane %v510_v11, 4 }
 0x285   : > { %v512_v13 = vadd.f32 %v511_v12, %v510_v11 }
 0x287   : > { %v513_v14 = vrot.slane %v512_v13, 2 }
 0x289   : > { %v514_v15 = vadd.f32 %v513_v14, %v512_v13 }
 0x28b   : > { %v515_v9 = vrot.slane %v514_v15, 1 }
 0x28d   : > { %v516_v16 = vadd.f32 %v515_v9, %v514_v15 }
 0x28f   : > { %685 = vpush %v516_v16 }
 0x2c0   : > { %s686_s5 = spop %685 }
 0x2c1   : > { %v518_v18 = vstv %s686_s5 }
 0x2c2   : > { %v519_v19 = vadd.f32 %v518_v18, %v500_v17 }
 0x2c4   : > { %521 = vst.msk [vmem:[#allocation2] sm:$0x1] %vm520_vm9, %v519_v19 }
 0x2c5 PF: > { %p674_p4 = scmp.ne.s32.totalorder %s855_s15, 1 }
 0x2c7   : > { %525 = sbr.rel (%p674_p4) target bundleno = 837 (0x345), region = 48 }
 0x2cc   : > { %v526_v20 = vld [vmem:[#allocation2] sm:$0x1]  ;;  %v876_v21 = vmov 0  }
 0x2cd   : > { %776 = vset.pattern.permute.xlu0 %v876_v21  ;;  %v527_v22 = vmul.f32 0.025, %v526_v20 }
 0x2cf   : > { %v529_v23 = vperm.slane %v527_v22, 0 }
 0x2d1   : > { %531 = vperm.xlu0 %776, %v529_v23  }
 0x343   : > { %v532_v24 = vpop.permute.xlu0 %531 }
 0x344   : > { %534 = vst [vmem:[%s304_s23] sm:$0xff] %v532_v24 }
 0x345 PF: > { %s676_s8 = sshll.u32 %s859_s16, 3  ;;  %s548_s11 = sshll.u32 %s304_s23, 4  ;;  %s549_s11 = int_to_ptr.vmem [resolvable:$true] %s548_s11 }
 0x346   : > { %s546_s15 = scalar_lea.hbm %s1061_s3, %s676_s8  ;;  %s1067_s21 = sand.u32 1, %s847_s13  }
 0x347   : > { %s550_s20 = sshll.u32 %s546_s15, 4  ;;  %s536_s26 = scalar_lea.sflag [#allocation4], %s1067_s21  ;;  %s551_s20 = int_to_ptr.hbm [resolvable:$true] %s550_s20 }
 0x348   : > { %s791_s27 = sshra.s32 %s551_s20, 4  ;;  %s797_s6 = scalar_lea.hbm %s1061_s3, 16  ;;  %s792_s27 = int_to_ptr.hbm [resolvable:$true] %s791_s27 }
 0x349   : > { %s793_s30 = scalar_lea.hbm %s792_s27, 8  ;;  %p798_p8 = scmp.lt.s32.totalorder %s792_s27, %s1061_s3 }
 0x34a   : > { %p794_p5 = scmp.ne.s32.totalorder %s792_s27, %s793_s30  ;;  %p799_p10 = scmp.lt.s32.totalorder %s797_s6, %s793_s30 }
 0x34c   : > { %p795_p6 = pnand %p794_p5, %p946_p3  ;;  %p800_p11 = por %p799_p10, %p798_p8 }
 0x34e   : > { %p796_p7 = pneg %p795_p6 }
 0x350   : > { %p801_p12 = pnand %p800_p11, %p796_p7 }
 0x352   : > { %804 = shalt.err (!%p801_p12)
}
 0x353   : > { %687 = dma.vmem_to_hbm [thread:$0]  (%p946_p3), %s549_s11, 128, %s551_s20, %s536_s26  }
 0x354 PF: > { %p693_p13 = scmp.ge.s32.totalorder %s871_s19, 2  ;;  %s562_s23 = sand.u32 1, %s843_s12  }
 0x355   : > { %s563_s4 = scalar_lea.sflag [#allocation4], %s562_s23 }
 0x356   : > { %p690_p0 = pnand %p693_p13, %p956_p9 }
 0x358   : > { %p691_p1 = pneg %p690_p0 }
 0x35a   : > { %838 = dma.done.wait (%p691_p1), %s563_s4, 128  }
 0x35b   : > { %840 = vsyncadd (%p691_p1), %s563_s4, 4294967168  ;;  %s16_s19 = sadd.s32 1, %s871_s19   ;;  %s1068_s24 = sld [smem:[#allocation6_spill]] }
 0x35c   : > { %p13_p2 = scmp.ge.s32.totalorder %s16_s19, 6   ;;  %s1069_s12 = smov %s847_s13 }
 0x35d   : > { %s1070_s13 = smov %s851_s14  ;;  %s1071_s14 = smov %s964_s28 }
 0x35e   : > { %s1072_s15 = smov %s863_s17  ;;  %s1073_s16 = smov %s867_s18 }
 0x35f   : > { %s1074_s17 = smov %s1077_s22  ;;  %15 = sbr.rel (!%p13_p2) target bundleno = 5 (0x5), region = 89 }
 0x361   : > { %s1075_s18 = smov %s1068_s24 }
 0x364   :  { %569 = vsyncpa [#allocation4], 1 }
 0x365   :  { %571 = vsyncpa [#allocation4 + $0x1], 1 }

</bundles_post_ra>
